<compile_context>
chip_gen: v6e
topology: v6e:2x2x1
jax: 0.10.0
libtpu: 0.0.40
codegen_flags: <defaults>
</compile_context>

<pallas_src>
import functools

import numpy as np

import jax
import jax.numpy as jnp
from jax.experimental import pallas as pl
from jax.experimental.pallas import tpu as pltpu


# --------------------------------- fused kernel ------------------------------------

def _encoder_kernel(*refs, plan):
    """One grid step == one batch element. All intermediates stay on-chip.

    Activation layout inside the kernel: (channels, flat_spatial) where
    flat_spatial index = h * row_stride + w (row_stride = stage input width).
    """
    it = iter(refs)
    x_ref = next(it)                       # (1, Cin, H*W)
    act = x_ref[0]                         # (Cin, H*W) f32

    for stage in plan:
        wd = stage["W"]                    # row stride (stage input width)
        k = stage["K"]
        for nw in stage["conv_nws"]:       # one entry per conv block in the stage
            w_ref = next(it)               # (K*K, Cout, Cin)
            b_ref = next(it)               # (Cout, 1)
            cout = w_ref.shape[1]
            acc = jnp.zeros((cout, nw), jnp.float32)
            # "wide" valid conv: each tap is a contiguous lane-shifted slab matmul.
            for dh in range(k):
                for dw in range(k):
                    off = dh * wd + dw
                    acc = acc + jnp.dot(w_ref[dh * k + dw],
                                        act[:, off:off + nw],
                                        preferred_element_type=jnp.float32)
            act = jnp.maximum(acc + b_ref[...], 0.0)        # Conv2d(valid) + ReLU
        # MaxPool2d((2,2)) stride 2, floor mode: shifted maxima + one-hot selection.
        s_ref = next(it)                    # (nw-1-wd, Hp*Wp) one-hot selection
        cols = nw - 1
        m1 = jnp.maximum(act[:, 0:cols], act[:, 1:cols + 1])        # max over w-pairs
        m2 = jnp.maximum(m1[:, 0:cols - wd], m1[:, wd:cols])        # max over h-pairs
        act = jnp.dot(m2, s_ref[...], preferred_element_type=jnp.float32)  # (C, Hp*Wp)

    # ---- Flatten (NCHW order, folded into w1) -> Linear -> LeakyReLU -> 2 heads ----
    w1pt_ref = next(it)        # (Sf, hidden, Cf)   : w1 pre-permuted, transposed form
    b1_ref = next(it)          # (hidden, 1)
    wcatt_ref = next(it)       # (2*latent, hidden) : [wf ; ws]^T
    bcat_ref = next(it)        # (2*latent, 1)
    o_ref = next(it)           # (1, 2*latent, 1)

    sf = w1pt_ref.shape[0]
    h = b1_ref[...]
    for s in range(sf):
        h = h + jnp.dot(w1pt_ref[s], act[:, s:s + 1],
                        preferred_element_type=jnp.float32)
    h = jnp.where(h >= 0.0, h, 0.01 * h)                    # nn.LeakyReLU() default slope
    out = jnp.dot(wcatt_ref[...], h,
                  preferred_element_type=jnp.float32) + bcat_ref[...]
    o_ref[...] = out[None, :, :]


def encoder_forward(x_nchw, operands, plan, latent_dim):
    """x_nchw: (N, C, H, W) f32, exactly like the PyTorch module's input."""
    n, c, hh, ww = x_nchw.shape
    x2 = x_nchw.astype(jnp.float32).reshape(n, c, hh * ww)   # free bitcast, stays NCHW

    in_specs = [pl.BlockSpec((1, c, hh * ww), lambda i: (i, 0, 0))]
    for op in operands:   # weights / selection matrices: full-array constant blocks
        in_specs.append(pl.BlockSpec(op.shape, lambda i, _nd=op.ndim: (0,) * _nd))

    out = pl.pallas_call(
        functools.partial(_encoder_kernel, plan=plan),
        out_shape=jax.ShapeDtypeStruct((n, 2 * latent_dim, 1), jnp.float32),
        grid=(n,),
        in_specs=in_specs,
        out_specs=pl.BlockSpec((1, 2 * latent_dim, 1), lambda i: (i, 0, 0)),
        compiler_params=pltpu.CompilerParams(
            dimension_semantics=("parallel",)),        # batch across TCs (v7x megacore)
    )(x2, *operands)

    out2 = out[:, :, 0]                                # (N, 2*latent)  -- tiny XLA slice
    return out2[:, :latent_dim], out2[:, latent_dim:]


# ----------------------------- parameters & packing --------------------------------

def build_encoder_params(input_dim, latent_dim, depth, blocks, filt, kernel, key):
    """Raw (PyTorch-shaped) parameters: conv weights HWIO, dense weights (in, out)."""
    channels, h, w = input_dim
    k = kernel
    kit = iter(jax.random.split(key, depth * blocks * 2 + 6))
    stages = []
    f = filt
    cin = channels
    for _ in range(depth):
        convs = []
        for _ in range(blocks):
            wv = 0.1 * jax.random.normal(next(kit), (k, k, cin, f), jnp.float32)
            bv = 0.1 * jax.random.normal(next(kit), (f,), jnp.float32)
            convs.append((wv, bv))
            cin = f
            h, w = h - k + 1, w - k + 1
        stages.append(convs)
        h, w = (h - 2) // 2 + 1, (w - 2) // 2 + 1       # MaxPool2d((2,2)), floor
        f *= 2
    flat = h * w * cin
    hdim = 2 * latent_dim
    raw = {
        "stages": stages,
        "w1": 0.1 * jax.random.normal(next(kit), (flat, hdim), jnp.float32),
        "b1": 0.1 * jax.random.normal(next(kit), (hdim,), jnp.float32),
        "wf": 0.1 * jax.random.normal(next(kit), (hdim, latent_dim), jnp.float32),
        "bf": 0.1 * jax.random.normal(next(kit), (latent_dim,), jnp.float32),
        "ws": 0.1 * jax.random.normal(next(kit), (hdim, latent_dim), jnp.float32),
        "bs": 0.1 * jax.random.normal(next(kit), (latent_dim,), jnp.float32),
    }
    return raw, (cin, h, w)


def pack_encoder_operands(raw, input_dim, kernel):
    """Rearrange raw params (once, outside the hot path) into kernel-ready operands."""
    k = kernel
    _, h0, w0 = input_dim
    operands, plan = [], []
    h, w = h0, w0
    for convs in raw["stages"]:
        wd = w                       # row stride for this stage
        hh, ww = h, w
        conv_nws = []
        for (w_hwio, b) in convs:
            cin, cout = w_hwio.shape[2], w_hwio.shape[3]
            # (K,K,Cin,Cout) -> (K*K, Cout, Cin), tap index t = dh*K + dw
            operands.append(jnp.transpose(w_hwio.reshape(k * k, cin, cout), (0, 2, 1)))
            operands.append(b.reshape(cout, 1))
            hh, ww = hh - (k - 1), ww - (k - 1)
            conv_nws.append((hh - 1) * wd + ww)          # "wide" activation length
        hp, wp = (hh - 2) // 2 + 1, (ww - 2) // 2 + 1
        m2_cols = conv_nws[-1] - 1 - wd
        sel = np.zeros((m2_cols, hp * wp), np.float32)   # one-hot pool-select matrix
        for po in range(hp):
            for pw in range(wp):
                sel[2 * po * wd + 2 * pw, po * wp + pw] = 1.0
        operands.append(jnp.asarray(sel))
        plan.append({"W": wd, "K": k, "conv_nws": tuple(conv_nws)})
        h, w = hp, wp
    c_final = raw["stages"][-1][-1][0].shape[3]
    sf = h * w
    hdim = raw["w1"].shape[1]
    latent = raw["wf"].shape[1]
    # NCHW flatten index = c*sf + s  ->  w1pT[s, j, c] = w1[c*sf + s, j]
    w1pt = jnp.transpose(raw["w1"].reshape(c_final, sf, hdim), (1, 2, 0))
    operands += [
        w1pt,
        raw["b1"].reshape(hdim, 1),
        jnp.concatenate([raw["wf"].T, raw["ws"].T], axis=0),          # (2*latent, hdim)
        jnp.concatenate([raw["bf"], raw["bs"]]).reshape(2 * latent, 1),
    ]
    return tuple(operands), tuple(plan)


# ------------------------------- pure-JAX reference ---------------------------------

def _reference_forward(x, raw):
    a = x.astype(jnp.float32)
    hp = jax.lax.Precision.HIGHEST
    for convs in raw["stages"]:
        for (w_hwio, b) in convs:
            a = jax.lax.conv_general_dilated(
                a, w_hwio, window_strides=(1, 1), padding="VALID",
                dimension_numbers=("NCHW", "HWIO", "NCHW"), precision=hp)
            a = jnp.maximum(a + b.reshape(1, -1, 1, 1), 0.0)
        a = jax.lax.reduce_window(a, -jnp.inf, jax.lax.max,
                                  (1, 1, 2, 2), (1, 1, 2, 2), "VALID")
    flat = a.reshape(a.shape[0], -1)                      # nn.Flatten, NCHW order
    h = jnp.dot(flat, raw["w1"], precision=hp) + raw["b1"]
    h = jnp.where(h >= 0.0, h, 0.01 * h)
    x_f = jnp.dot(h, raw["wf"], precision=hp) + raw["bf"]
    x_s = jnp.dot(h, raw["ws"], precision=hp) + raw["bs"]
    return x_f, x_s


# ----------------------------------------- main -------------------------------------

if __name__ == "__main__":
    N, C, H, W = 2, 4, 16, 16
    latent_dim, depth, blocks, filt, kernel = 8, 2, 1, 8, 3

    x = jax.random.normal(jax.random.PRNGKey(0), (N, C, H, W), jnp.float32)
    raw, state_shape = build_encoder_params(
        (C, H, W), latent_dim, depth, blocks, filt, kernel, key=jax.random.PRNGKey(1))
    operands, plan = pack_encoder_operands(raw, (C, H, W), kernel)

    fwd = jax.jit(functools.partial(encoder_forward, plan=plan, latent_dim=latent_dim))
    x_f, x_s = fwd(x, operands)
    jax.block_until_ready((x_f, x_s))

    # correctness vs. a pure-JAX reference of the PyTorch forward
    rf, rs = _reference_forward(x, raw)
    np.testing.assert_allclose(np.asarray(x_f), np.asarray(rf), rtol=1e-2, atol=1e-2)
    np.testing.assert_allclose(np.asarray(x_s), np.asarray(rs), rtol=1e-2, atol=1e-2)

    assert x_f.shape == (N, latent_dim) and x_s.shape == (N, latent_dim)
    assert x_f.dtype == jnp.float32 and x_s.dtype == jnp.float32
    assert state_shape == (filt * (2 ** (depth - 1)), state_shape[1], state_shape[2])
    print("KERNEL_OK")
</pallas_src>

<mosaic_0001>
module attributes {stable_mosaic.version = 11 : i64} {
  func.func @_encoder_kernel(%arg0: i32, %arg1: memref<1x4x256xf32, #tpu.memory_space<vmem>>, %arg2: memref<9x8x4xf32, #tpu.memory_space<vmem>>, %arg3: memref<8x1xf32, #tpu.memory_space<vmem>>, %arg4: memref<205x49xf32, #tpu.memory_space<vmem>>, %arg5: memref<9x16x8xf32, #tpu.memory_space<vmem>>, %arg6: memref<16x1xf32, #tpu.memory_space<vmem>>, %arg7: memref<25x4xf32, #tpu.memory_space<vmem>>, %arg8: memref<4x16x16xf32, #tpu.memory_space<vmem>>, %arg9: memref<16x1xf32, #tpu.memory_space<vmem>>, %arg10: memref<16x16xf32, #tpu.memory_space<vmem>>, %arg11: memref<16x1xf32, #tpu.memory_space<vmem>>, %arg12: memref<1x16x1xf32, #tpu.memory_space<vmem>>) attributes {dimension_semantics = [#tpu.dimension_semantics<parallel>], iteration_bounds = array<i64: 2>, scalar_prefetch = 0 : i64, scratch_operands = 0 : i64, tpu.core_type = #tpu.core_type<tc>, window_params = [{transform_indices = @transform_0, window_bounds = array<i64: 1, 4, 256>}, {pipeline_mode = #tpu.pipeline_mode<synchronous>, transform_indices = @transform_1, window_bounds = array<i64: 9, 8, 4>}, {pipeline_mode = #tpu.pipeline_mode<synchronous>, transform_indices = @transform_2, window_bounds = array<i64: 8, 1>}, {pipeline_mode = #tpu.pipeline_mode<synchronous>, transform_indices = @transform_3, window_bounds = array<i64: 205, 49>}, {pipeline_mode = #tpu.pipeline_mode<synchronous>, transform_indices = @transform_4, window_bounds = array<i64: 9, 16, 8>}, {pipeline_mode = #tpu.pipeline_mode<synchronous>, transform_indices = @transform_5, window_bounds = array<i64: 16, 1>}, {pipeline_mode = #tpu.pipeline_mode<synchronous>, transform_indices = @transform_6, window_bounds = array<i64: 25, 4>}, {pipeline_mode = #tpu.pipeline_mode<synchronous>, transform_indices = @transform_7, window_bounds = array<i64: 4, 16, 16>}, {pipeline_mode = #tpu.pipeline_mode<synchronous>, transform_indices = @transform_8, window_bounds = array<i64: 16, 1>}, {pipeline_mode = #tpu.pipeline_mode<synchronous>, transform_indices = @transform_9, window_bounds = array<i64: 16, 16>}, {pipeline_mode = #tpu.pipeline_mode<synchronous>, transform_indices = @transform_10, window_bounds = array<i64: 16, 1>}, {transform_indices = @transform_11, window_bounds = array<i64: 1, 16, 1>}]} {
    %c0 = arith.constant 0 : index
    %c0_0 = arith.constant 0 : index
    %c0_1 = arith.constant 0 : index
    %0 = vector.load %arg1[%c0, %c0_0, %c0_1] : memref<1x4x256xf32, #tpu.memory_space<vmem>>, vector<1x4x256xf32>
    %1 = vector.shape_cast %0 : vector<1x4x256xf32> to vector<4x256xf32>
    %cst = arith.constant 0.000000e+00 : f32
    %2 = vector.broadcast %cst : f32 to vector<8x222xf32>
    %c0_2 = arith.constant 0 : index
    %c0_3 = arith.constant 0 : index
    %c0_4 = arith.constant 0 : index
    %3 = vector.load %arg2[%c0_2, %c0_3, %c0_4] : memref<9x8x4xf32, #tpu.memory_space<vmem>>, vector<1x8x4xf32>
    %4 = vector.shape_cast %3 : vector<1x8x4xf32> to vector<8x4xf32>
    %5 = vector.extract_strided_slice %1 {offsets = [0, 0], sizes = [4, 222], strides = [1, 1]} : vector<4x256xf32> to vector<4x222xf32>
    %cst_5 = arith.constant dense<0.000000e+00> : vector<8x222xf32>
    %6 = tpu.matmul %4, %5, %cst_5 {dimension_numbers = #tpu.dot_dimension_numbers<[1], [0], [0], [1], [0, 0, 1, 1], [], []>} : vector<8x4xf32>, vector<4x222xf32>, vector<8x222xf32> -> vector<8x222xf32>
    %7 = arith.addf %2, %6 : vector<8x222xf32>
    %c1 = arith.constant 1 : index
    %c0_6 = arith.constant 0 : index
    %c0_7 = arith.constant 0 : index
    %8 = vector.load %arg2[%c1, %c0_6, %c0_7] : memref<9x8x4xf32, #tpu.memory_space<vmem>>, vector<1x8x4xf32>
    %9 = vector.shape_cast %8 : vector<1x8x4xf32> to vector<8x4xf32>
    %10 = vector.extract_strided_slice %1 {offsets = [0, 1], sizes = [4, 222], strides = [1, 1]} : vector<4x256xf32> to vector<4x222xf32>
    %cst_8 = arith.constant dense<0.000000e+00> : vector<8x222xf32>
    %11 = tpu.matmul %9, %10, %cst_8 {dimension_numbers = #tpu.dot_dimension_numbers<[1], [0], [0], [1], [0, 0, 1, 1], [], []>} : vector<8x4xf32>, vector<4x222xf32>, vector<8x222xf32> -> vector<8x222xf32>
    %12 = arith.addf %7, %11 : vector<8x222xf32>
    %c2 = arith.constant 2 : index
    %c0_9 = arith.constant 0 : index
    %c0_10 = arith.constant 0 : index
    %13 = vector.load %arg2[%c2, %c0_9, %c0_10] : memref<9x8x4xf32, #tpu.memory_space<vmem>>, vector<1x8x4xf32>
    %14 = vector.shape_cast %13 : vector<1x8x4xf32> to vector<8x4xf32>
    %15 = vector.extract_strided_slice %1 {offsets = [0, 2], sizes = [4, 222], strides = [1, 1]} : vector<4x256xf32> to vector<4x222xf32>
    %cst_11 = arith.constant dense<0.000000e+00> : vector<8x222xf32>
    %16 = tpu.matmul %14, %15, %cst_11 {dimension_numbers = #tpu.dot_dimension_numbers<[1], [0], [0], [1], [0, 0, 1, 1], [], []>} : vector<8x4xf32>, vector<4x222xf32>, vector<8x222xf32> -> vector<8x222xf32>
    %17 = arith.addf %12, %16 : vector<8x222xf32>
    %c3 = arith.constant 3 : index
    %c0_12 = arith.constant 0 : index
    %c0_13 = arith.constant 0 : index
    %18 = vector.load %arg2[%c3, %c0_12, %c0_13] : memref<9x8x4xf32, #tpu.memory_space<vmem>>, vector<1x8x4xf32>
    %19 = vector.shape_cast %18 : vector<1x8x4xf32> to vector<8x4xf32>
    %20 = vector.extract_strided_slice %1 {offsets = [0, 16], sizes = [4, 222], strides = [1, 1]} : vector<4x256xf32> to vector<4x222xf32>
    %cst_14 = arith.constant dense<0.000000e+00> : vector<8x222xf32>
    %21 = tpu.matmul %19, %20, %cst_14 {dimension_numbers = #tpu.dot_dimension_numbers<[1], [0], [0], [1], [0, 0, 1, 1], [], []>} : vector<8x4xf32>, vector<4x222xf32>, vector<8x222xf32> -> vector<8x222xf32>
    %22 = arith.addf %17, %21 : vector<8x222xf32>
    %c4 = arith.constant 4 : index
    %c0_15 = arith.constant 0 : index
    %c0_16 = arith.constant 0 : index
    %23 = vector.load %arg2[%c4, %c0_15, %c0_16] : memref<9x8x4xf32, #tpu.memory_space<vmem>>, vector<1x8x4xf32>
    %24 = vector.shape_cast %23 : vector<1x8x4xf32> to vector<8x4xf32>
    %25 = vector.extract_strided_slice %1 {offsets = [0, 17], sizes = [4, 222], strides = [1, 1]} : vector<4x256xf32> to vector<4x222xf32>
    %cst_17 = arith.constant dense<0.000000e+00> : vector<8x222xf32>
    %26 = tpu.matmul %24, %25, %cst_17 {dimension_numbers = #tpu.dot_dimension_numbers<[1], [0], [0], [1], [0, 0, 1, 1], [], []>} : vector<8x4xf32>, vector<4x222xf32>, vector<8x222xf32> -> vector<8x222xf32>
    %27 = arith.addf %22, %26 : vector<8x222xf32>
    %c5 = arith.constant 5 : index
    %c0_18 = arith.constant 0 : index
    %c0_19 = arith.constant 0 : index
    %28 = vector.load %arg2[%c5, %c0_18, %c0_19] : memref<9x8x4xf32, #tpu.memory_space<vmem>>, vector<1x8x4xf32>
    %29 = vector.shape_cast %28 : vector<1x8x4xf32> to vector<8x4xf32>
    %30 = vector.extract_strided_slice %1 {offsets = [0, 18], sizes = [4, 222], strides = [1, 1]} : vector<4x256xf32> to vector<4x222xf32>
    %cst_20 = arith.constant dense<0.000000e+00> : vector<8x222xf32>
    %31 = tpu.matmul %29, %30, %cst_20 {dimension_numbers = #tpu.dot_dimension_numbers<[1], [0], [0], [1], [0, 0, 1, 1], [], []>} : vector<8x4xf32>, vector<4x222xf32>, vector<8x222xf32> -> vector<8x222xf32>
    %32 = arith.addf %27, %31 : vector<8x222xf32>
    %c6 = arith.constant 6 : index
    %c0_21 = arith.constant 0 : index
    %c0_22 = arith.constant 0 : index
    %33 = vector.load %arg2[%c6, %c0_21, %c0_22] : memref<9x8x4xf32, #tpu.memory_space<vmem>>, vector<1x8x4xf32>
    %34 = vector.shape_cast %33 : vector<1x8x4xf32> to vector<8x4xf32>
    %35 = vector.extract_strided_slice %1 {offsets = [0, 32], sizes = [4, 222], strides = [1, 1]} : vector<4x256xf32> to vector<4x222xf32>
    %cst_23 = arith.constant dense<0.000000e+00> : vector<8x222xf32>
    %36 = tpu.matmul %34, %35, %cst_23 {dimension_numbers = #tpu.dot_dimension_numbers<[1], [0], [0], [1], [0, 0, 1, 1], [], []>} : vector<8x4xf32>, vector<4x222xf32>, vector<8x222xf32> -> vector<8x222xf32>
    %37 = arith.addf %32, %36 : vector<8x222xf32>
    %c7 = arith.constant 7 : index
    %c0_24 = arith.constant 0 : index
    %c0_25 = arith.constant 0 : index
    %38 = vector.load %arg2[%c7, %c0_24, %c0_25] : memref<9x8x4xf32, #tpu.memory_space<vmem>>, vector<1x8x4xf32>
    %39 = vector.shape_cast %38 : vector<1x8x4xf32> to vector<8x4xf32>
    %40 = vector.extract_strided_slice %1 {offsets = [0, 33], sizes = [4, 222], strides = [1, 1]} : vector<4x256xf32> to vector<4x222xf32>
    %cst_26 = arith.constant dense<0.000000e+00> : vector<8x222xf32>
    %41 = tpu.matmul %39, %40, %cst_26 {dimension_numbers = #tpu.dot_dimension_numbers<[1], [0], [0], [1], [0, 0, 1, 1], [], []>} : vector<8x4xf32>, vector<4x222xf32>, vector<8x222xf32> -> vector<8x222xf32>
    %42 = arith.addf %37, %41 : vector<8x222xf32>
    %c8 = arith.constant 8 : index
    %c0_27 = arith.constant 0 : index
    %c0_28 = arith.constant 0 : index
    %43 = vector.load %arg2[%c8, %c0_27, %c0_28] : memref<9x8x4xf32, #tpu.memory_space<vmem>>, vector<1x8x4xf32>
    %44 = vector.shape_cast %43 : vector<1x8x4xf32> to vector<8x4xf32>
    %45 = vector.extract_strided_slice %1 {offsets = [0, 34], sizes = [4, 222], strides = [1, 1]} : vector<4x256xf32> to vector<4x222xf32>
    %cst_29 = arith.constant dense<0.000000e+00> : vector<8x222xf32>
    %46 = tpu.matmul %44, %45, %cst_29 {dimension_numbers = #tpu.dot_dimension_numbers<[1], [0], [0], [1], [0, 0, 1, 1], [], []>} : vector<8x4xf32>, vector<4x222xf32>, vector<8x222xf32> -> vector<8x222xf32>
    %47 = arith.addf %42, %46 : vector<8x222xf32>
    %c0_30 = arith.constant 0 : index
    %c0_31 = arith.constant 0 : index
    %48 = vector.load %arg3[%c0_30, %c0_31] : memref<8x1xf32, #tpu.memory_space<vmem>>, vector<8x1xf32>
    %49 = vector.broadcast %48 : vector<8x1xf32> to vector<8x222xf32>
    %50 = arith.addf %47, %49 : vector<8x222xf32>
    %cst_32 = arith.constant 0.000000e+00 : f32
    %51 = vector.broadcast %cst_32 : f32 to vector<8x222xf32>
    %52 = arith.maximumf %50, %51 : vector<8x222xf32>
    %53 = vector.extract_strided_slice %52 {offsets = [0, 0], sizes = [8, 221], strides = [1, 1]} : vector<8x222xf32> to vector<8x221xf32>
    %54 = vector.extract_strided_slice %52 {offsets = [0, 1], sizes = [8, 221], strides = [1, 1]} : vector<8x222xf32> to vector<8x221xf32>
    %55 = arith.maximumf %53, %54 : vector<8x221xf32>
    %56 = vector.extract_strided_slice %55 {offsets = [0, 0], sizes = [8, 205], strides = [1, 1]} : vector<8x221xf32> to vector<8x205xf32>
    %57 = vector.extract_strided_slice %55 {offsets = [0, 16], sizes = [8, 205], strides = [1, 1]} : vector<8x221xf32> to vector<8x205xf32>
    %58 = arith.maximumf %56, %57 : vector<8x205xf32>
    %c0_33 = arith.constant 0 : index
    %c0_34 = arith.constant 0 : index
    %59 = vector.load %arg4[%c0_33, %c0_34] : memref<205x49xf32, #tpu.memory_space<vmem>>, vector<205x49xf32>
    %cst_35 = arith.constant dense<0.000000e+00> : vector<8x49xf32>
    %60 = tpu.matmul %58, %59, %cst_35 {dimension_numbers = #tpu.dot_dimension_numbers<[1], [0], [0], [1], [0, 0, 1, 1], [], []>} : vector<8x205xf32>, vector<205x49xf32>, vector<8x49xf32> -> vector<8x49xf32>
    %cst_36 = arith.constant 0.000000e+00 : f32
    %61 = vector.broadcast %cst_36 : f32 to vector<16x33xf32>
    %c0_37 = arith.constant 0 : index
    %c0_38 = arith.constant 0 : index
    %c0_39 = arith.constant 0 : index
    %62 = vector.load %arg5[%c0_37, %c0_38, %c0_39] : memref<9x16x8xf32, #tpu.memory_space<vmem>>, vector<1x16x8xf32>
    %63 = vector.shape_cast %62 : vector<1x16x8xf32> to vector<16x8xf32>
    %64 = vector.extract_strided_slice %60 {offsets = [0, 0], sizes = [8, 33], strides = [1, 1]} : vector<8x49xf32> to vector<8x33xf32>
    %cst_40 = arith.constant dense<0.000000e+00> : vector<16x33xf32>
    %65 = tpu.matmul %63, %64, %cst_40 {dimension_numbers = #tpu.dot_dimension_numbers<[1], [0], [0], [1], [0, 0, 1, 1], [], []>} : vector<16x8xf32>, vector<8x33xf32>, vector<16x33xf32> -> vector<16x33xf32>
    %66 = arith.addf %61, %65 : vector<16x33xf32>
    %c1_41 = arith.constant 1 : index
    %c0_42 = arith.constant 0 : index
    %c0_43 = arith.constant 0 : index
    %67 = vector.load %arg5[%c1_41, %c0_42, %c0_43] : memref<9x16x8xf32, #tpu.memory_space<vmem>>, vector<1x16x8xf32>
    %68 = vector.shape_cast %67 : vector<1x16x8xf32> to vector<16x8xf32>
    %69 = vector.extract_strided_slice %60 {offsets = [0, 1], sizes = [8, 33], strides = [1, 1]} : vector<8x49xf32> to vector<8x33xf32>
    %cst_44 = arith.constant dense<0.000000e+00> : vector<16x33xf32>
    %70 = tpu.matmul %68, %69, %cst_44 {dimension_numbers = #tpu.dot_dimension_numbers<[1], [0], [0], [1], [0, 0, 1, 1], [], []>} : vector<16x8xf32>, vector<8x33xf32>, vector<16x33xf32> -> vector<16x33xf32>
    %71 = arith.addf %66, %70 : vector<16x33xf32>
    %c2_45 = arith.constant 2 : index
    %c0_46 = arith.constant 0 : index
    %c0_47 = arith.constant 0 : index
    %72 = vector.load %arg5[%c2_45, %c0_46, %c0_47] : memref<9x16x8xf32, #tpu.memory_space<vmem>>, vector<1x16x8xf32>
    %73 = vector.shape_cast %72 : vector<1x16x8xf32> to vector<16x8xf32>
    %74 = vector.extract_strided_slice %60 {offsets = [0, 2], sizes = [8, 33], strides = [1, 1]} : vector<8x49xf32> to vector<8x33xf32>
    %cst_48 = arith.constant dense<0.000000e+00> : vector<16x33xf32>
    %75 = tpu.matmul %73, %74, %cst_48 {dimension_numbers = #tpu.dot_dimension_numbers<[1], [0], [0], [1], [0, 0, 1, 1], [], []>} : vector<16x8xf32>, vector<8x33xf32>, vector<16x33xf32> -> vector<16x33xf32>
    %76 = arith.addf %71, %75 : vector<16x33xf32>
    %c3_49 = arith.constant 3 : index
    %c0_50 = arith.constant 0 : index
    %c0_51 = arith.constant 0 : index
    %77 = vector.load %arg5[%c3_49, %c0_50, %c0_51] : memref<9x16x8xf32, #tpu.memory_space<vmem>>, vector<1x16x8xf32>
    %78 = vector.shape_cast %77 : vector<1x16x8xf32> to vector<16x8xf32>
    %79 = vector.extract_strided_slice %60 {offsets = [0, 7], sizes = [8, 33], strides = [1, 1]} : vector<8x49xf32> to vector<8x33xf32>
    %cst_52 = arith.constant dense<0.000000e+00> : vector<16x33xf32>
    %80 = tpu.matmul %78, %79, %cst_52 {dimension_numbers = #tpu.dot_dimension_numbers<[1], [0], [0], [1], [0, 0, 1, 1], [], []>} : vector<16x8xf32>, vector<8x33xf32>, vector<16x33xf32> -> vector<16x33xf32>
    %81 = arith.addf %76, %80 : vector<16x33xf32>
    %c4_53 = arith.constant 4 : index
    %c0_54 = arith.constant 0 : index
    %c0_55 = arith.constant 0 : index
    %82 = vector.load %arg5[%c4_53, %c0_54, %c0_55] : memref<9x16x8xf32, #tpu.memory_space<vmem>>, vector<1x16x8xf32>
    %83 = vector.shape_cast %82 : vector<1x16x8xf32> to vector<16x8xf32>
    %84 = vector.extract_strided_slice %60 {offsets = [0, 8], sizes = [8, 33], strides = [1, 1]} : vector<8x49xf32> to vector<8x33xf32>
    %cst_56 = arith.constant dense<0.000000e+00> : vector<16x33xf32>
    %85 = tpu.matmul %83, %84, %cst_56 {dimension_numbers = #tpu.dot_dimension_numbers<[1], [0], [0], [1], [0, 0, 1, 1], [], []>} : vector<16x8xf32>, vector<8x33xf32>, vector<16x33xf32> -> vector<16x33xf32>
    %86 = arith.addf %81, %85 : vector<16x33xf32>
    %c5_57 = arith.constant 5 : index
    %c0_58 = arith.constant 0 : index
    %c0_59 = arith.constant 0 : index
    %87 = vector.load %arg5[%c5_57, %c0_58, %c0_59] : memref<9x16x8xf32, #tpu.memory_space<vmem>>, vector<1x16x8xf32>
    %88 = vector.shape_cast %87 : vector<1x16x8xf32> to vector<16x8xf32>
    %89 = vector.extract_strided_slice %60 {offsets = [0, 9], sizes = [8, 33], strides = [1, 1]} : vector<8x49xf32> to vector<8x33xf32>
    %cst_60 = arith.constant dense<0.000000e+00> : vector<16x33xf32>
    %90 = tpu.matmul %88, %89, %cst_60 {dimension_numbers = #tpu.dot_dimension_numbers<[1], [0], [0], [1], [0, 0, 1, 1], [], []>} : vector<16x8xf32>, vector<8x33xf32>, vector<16x33xf32> -> vector<16x33xf32>
    %91 = arith.addf %86, %90 : vector<16x33xf32>
    %c6_61 = arith.constant 6 : index
    %c0_62 = arith.constant 0 : index
    %c0_63 = arith.constant 0 : index
    %92 = vector.load %arg5[%c6_61, %c0_62, %c0_63] : memref<9x16x8xf32, #tpu.memory_space<vmem>>, vector<1x16x8xf32>
    %93 = vector.shape_cast %92 : vector<1x16x8xf32> to vector<16x8xf32>
    %94 = vector.extract_strided_slice %60 {offsets = [0, 14], sizes = [8, 33], strides = [1, 1]} : vector<8x49xf32> to vector<8x33xf32>
    %cst_64 = arith.constant dense<0.000000e+00> : vector<16x33xf32>
    %95 = tpu.matmul %93, %94, %cst_64 {dimension_numbers = #tpu.dot_dimension_numbers<[1], [0], [0], [1], [0, 0, 1, 1], [], []>} : vector<16x8xf32>, vector<8x33xf32>, vector<16x33xf32> -> vector<16x33xf32>
    %96 = arith.addf %91, %95 : vector<16x33xf32>
    %c7_65 = arith.constant 7 : index
    %c0_66 = arith.constant 0 : index
    %c0_67 = arith.constant 0 : index
    %97 = vector.load %arg5[%c7_65, %c0_66, %c0_67] : memref<9x16x8xf32, #tpu.memory_space<vmem>>, vector<1x16x8xf32>
    %98 = vector.shape_cast %97 : vector<1x16x8xf32> to vector<16x8xf32>
    %99 = vector.extract_strided_slice %60 {offsets = [0, 15], sizes = [8, 33], strides = [1, 1]} : vector<8x49xf32> to vector<8x33xf32>
    %cst_68 = arith.constant dense<0.000000e+00> : vector<16x33xf32>
    %100 = tpu.matmul %98, %99, %cst_68 {dimension_numbers = #tpu.dot_dimension_numbers<[1], [0], [0], [1], [0, 0, 1, 1], [], []>} : vector<16x8xf32>, vector<8x33xf32>, vector<16x33xf32> -> vector<16x33xf32>
    %101 = arith.addf %96, %100 : vector<16x33xf32>
    %c8_69 = arith.constant 8 : index
    %c0_70 = arith.constant 0 : index
    %c0_71 = arith.constant 0 : index
    %102 = vector.load %arg5[%c8_69, %c0_70, %c0_71] : memref<9x16x8xf32, #tpu.memory_space<vmem>>, vector<1x16x8xf32>
    %103 = vector.shape_cast %102 : vector<1x16x8xf32> to vector<16x8xf32>
    %104 = vector.extract_strided_slice %60 {offsets = [0, 16], sizes = [8, 33], strides = [1, 1]} : vector<8x49xf32> to vector<8x33xf32>
    %cst_72 = arith.constant dense<0.000000e+00> : vector<16x33xf32>
    %105 = tpu.matmul %103, %104, %cst_72 {dimension_numbers = #tpu.dot_dimension_numbers<[1], [0], [0], [1], [0, 0, 1, 1], [], []>} : vector<16x8xf32>, vector<8x33xf32>, vector<16x33xf32> -> vector<16x33xf32>
    %106 = arith.addf %101, %105 : vector<16x33xf32>
    %c0_73 = arith.constant 0 : index
    %c0_74 = arith.constant 0 : index
    %107 = vector.load %arg6[%c0_73, %c0_74] : memref<16x1xf32, #tpu.memory_space<vmem>>, vector<16x1xf32>
    %108 = vector.broadcast %107 : vector<16x1xf32> to vector<16x33xf32>
    %109 = arith.addf %106, %108 : vector<16x33xf32>
    %cst_75 = arith.constant 0.000000e+00 : f32
    %110 = vector.broadcast %cst_75 : f32 to vector<16x33xf32>
    %111 = arith.maximumf %109, %110 : vector<16x33xf32>
    %112 = vector.extract_strided_slice %111 {offsets = [0, 0], sizes = [16, 32], strides = [1, 1]} : vector<16x33xf32> to vector<16x32xf32>
    %113 = vector.extract_strided_slice %111 {offsets = [0, 1], sizes = [16, 32], strides = [1, 1]} : vector<16x33xf32> to vector<16x32xf32>
    %114 = arith.maximumf %112, %113 : vector<16x32xf32>
    %115 = vector.extract_strided_slice %114 {offsets = [0, 0], sizes = [16, 25], strides = [1, 1]} : vector<16x32xf32> to vector<16x25xf32>
    %116 = vector.extract_strided_slice %114 {offsets = [0, 7], sizes = [16, 25], strides = [1, 1]} : vector<16x32xf32> to vector<16x25xf32>
    %117 = arith.maximumf %115, %116 : vector<16x25xf32>
    %c0_76 = arith.constant 0 : index
    %c0_77 = arith.constant 0 : index
    %118 = vector.load %arg7[%c0_76, %c0_77] : memref<25x4xf32, #tpu.memory_space<vmem>>, vector<25x4xf32>
    %cst_78 = arith.constant dense<0.000000e+00> : vector<16x4xf32>
    %119 = tpu.matmul %117, %118, %cst_78 {dimension_numbers = #tpu.dot_dimension_numbers<[1], [0], [0], [1], [0, 0, 1, 1], [], []>} : vector<16x25xf32>, vector<25x4xf32>, vector<16x4xf32> -> vector<16x4xf32>
    %c0_79 = arith.constant 0 : index
    %c0_80 = arith.constant 0 : index
    %120 = vector.load %arg9[%c0_79, %c0_80] : memref<16x1xf32, #tpu.memory_space<vmem>>, vector<16x1xf32>
    %c0_81 = arith.constant 0 : index
    %c0_82 = arith.constant 0 : index
    %c0_83 = arith.constant 0 : index
    %121 = vector.load %arg8[%c0_81, %c0_82, %c0_83] : memref<4x16x16xf32, #tpu.memory_space<vmem>>, vector<1x16x16xf32>
    %122 = vector.shape_cast %121 : vector<1x16x16xf32> to vector<16x16xf32>
    %123 = vector.extract_strided_slice %119 {offsets = [0, 0], sizes = [16, 1], strides = [1, 1]} : vector<16x4xf32> to vector<16x1xf32>
    %cst_84 = arith.constant dense<0.000000e+00> : vector<16x1xf32>
    %124 = tpu.matmul %122, %123, %cst_84 {dimension_numbers = #tpu.dot_dimension_numbers<[1], [0], [0], [1], [0, 0, 1, 1], [], []>} : vector<16x16xf32>, vector<16x1xf32>, vector<16x1xf32> -> vector<16x1xf32>
    %125 = arith.addf %120, %124 : vector<16x1xf32>
    %c1_85 = arith.constant 1 : index
    %c0_86 = arith.constant 0 : index
    %c0_87 = arith.constant 0 : index
    %126 = vector.load %arg8[%c1_85, %c0_86, %c0_87] : memref<4x16x16xf32, #tpu.memory_space<vmem>>, vector<1x16x16xf32>
    %127 = vector.shape_cast %126 : vector<1x16x16xf32> to vector<16x16xf32>
    %128 = vector.extract_strided_slice %119 {offsets = [0, 1], sizes = [16, 1], strides = [1, 1]} : vector<16x4xf32> to vector<16x1xf32>
    %cst_88 = arith.constant dense<0.000000e+00> : vector<16x1xf32>
    %129 = tpu.matmul %127, %128, %cst_88 {dimension_numbers = #tpu.dot_dimension_numbers<[1], [0], [0], [1], [0, 0, 1, 1], [], []>} : vector<16x16xf32>, vector<16x1xf32>, vector<16x1xf32> -> vector<16x1xf32>
    %130 = arith.addf %125, %129 : vector<16x1xf32>
    %c2_89 = arith.constant 2 : index
    %c0_90 = arith.constant 0 : index
    %c0_91 = arith.constant 0 : index
    %131 = vector.load %arg8[%c2_89, %c0_90, %c0_91] : memref<4x16x16xf32, #tpu.memory_space<vmem>>, vector<1x16x16xf32>
    %132 = vector.shape_cast %131 : vector<1x16x16xf32> to vector<16x16xf32>
    %133 = vector.extract_strided_slice %119 {offsets = [0, 2], sizes = [16, 1], strides = [1, 1]} : vector<16x4xf32> to vector<16x1xf32>
    %cst_92 = arith.constant dense<0.000000e+00> : vector<16x1xf32>
    %134 = tpu.matmul %132, %133, %cst_92 {dimension_numbers = #tpu.dot_dimension_numbers<[1], [0], [0], [1], [0, 0, 1, 1], [], []>} : vector<16x16xf32>, vector<16x1xf32>, vector<16x1xf32> -> vector<16x1xf32>
    %135 = arith.addf %130, %134 : vector<16x1xf32>
    %c3_93 = arith.constant 3 : index
    %c0_94 = arith.constant 0 : index
    %c0_95 = arith.constant 0 : index
    %136 = vector.load %arg8[%c3_93, %c0_94, %c0_95] : memref<4x16x16xf32, #tpu.memory_space<vmem>>, vector<1x16x16xf32>
    %137 = vector.shape_cast %136 : vector<1x16x16xf32> to vector<16x16xf32>
    %138 = vector.extract_strided_slice %119 {offsets = [0, 3], sizes = [16, 1], strides = [1, 1]} : vector<16x4xf32> to vector<16x1xf32>
    %cst_96 = arith.constant dense<0.000000e+00> : vector<16x1xf32>
    %139 = tpu.matmul %137, %138, %cst_96 {dimension_numbers = #tpu.dot_dimension_numbers<[1], [0], [0], [1], [0, 0, 1, 1], [], []>} : vector<16x16xf32>, vector<16x1xf32>, vector<16x1xf32> -> vector<16x1xf32>
    %140 = arith.addf %135, %139 : vector<16x1xf32>
    %cst_97 = arith.constant 0.000000e+00 : f32
    %141 = vector.broadcast %cst_97 : f32 to vector<16x1xf32>
    %142 = arith.cmpf oge, %140, %141 : vector<16x1xf32>
    %cst_98 = arith.constant 0.00999999977 : f32
    %143 = vector.broadcast %cst_98 : f32 to vector<16x1xf32>
    %144 = arith.mulf %143, %140 : vector<16x1xf32>
    %145 = arith.select %142, %140, %144 : vector<16x1xi1>, vector<16x1xf32>
    %c0_99 = arith.constant 0 : index
    %c0_100 = arith.constant 0 : index
    %146 = vector.load %arg10[%c0_99, %c0_100] : memref<16x16xf32, #tpu.memory_space<vmem>>, vector<16x16xf32>
    %cst_101 = arith.constant dense<0.000000e+00> : vector<16x1xf32>
    %147 = tpu.matmul %146, %145, %cst_101 {dimension_numbers = #tpu.dot_dimension_numbers<[1], [0], [0], [1], [0, 0, 1, 1], [], []>} : vector<16x16xf32>, vector<16x1xf32>, vector<16x1xf32> -> vector<16x1xf32>
    %c0_102 = arith.constant 0 : index
    %c0_103 = arith.constant 0 : index
    %148 = vector.load %arg11[%c0_102, %c0_103] : memref<16x1xf32, #tpu.memory_space<vmem>>, vector<16x1xf32>
    %149 = arith.addf %147, %148 : vector<16x1xf32>
    %150 = vector.shape_cast %149 : vector<16x1xf32> to vector<1x16x1xf32>
    %c0_104 = arith.constant 0 : index
    %c0_105 = arith.constant 0 : index
    %c0_106 = arith.constant 0 : index
    %151 = vector.load %arg12[%c0_104, %c0_105, %c0_106] : memref<1x16x1xf32, #tpu.memory_space<vmem>>, vector<1x16x1xf32>
    tpu.vector_store %arg12[%c0_104, %c0_105, %c0_106], %150 {strides = array<i32>} : memref<1x16x1xf32, #tpu.memory_space<vmem>>, vector<1x16x1xf32>,
    return
  }
  func.func @transform_0(%arg0: i32) -> (i32, i32, i32) {
    %c0_i32 = arith.constant 0 : i32
    %c0_i32_0 = arith.constant 0 : i32
    %c0_i32_1 = arith.constant 0 : i32
    return %arg0, %c0_i32, %c0_i32_0 : i32, i32, i32
  }
  func.func @transform_1(%arg0: i32) -> (i32, i32, i32) {
    %c0_i32 = arith.constant 0 : i32
    %c0_i32_0 = arith.constant 0 : i32
    %c0_i32_1 = arith.constant 0 : i32
    %c0_i32_2 = arith.constant 0 : i32
    return %c0_i32, %c0_i32_0, %c0_i32_1 : i32, i32, i32
  }
  func.func @transform_2(%arg0: i32) -> (i32, i32) {
    %c0_i32 = arith.constant 0 : i32
    %c0_i32_0 = arith.constant 0 : i32
    %c0_i32_1 = arith.constant 0 : i32
    return %c0_i32, %c0_i32_0 : i32, i32
  }
  func.func @transform_3(%arg0: i32) -> (i32, i32) {
    %c0_i32 = arith.constant 0 : i32
    %c0_i32_0 = arith.constant 0 : i32
    %c0_i32_1 = arith.constant 0 : i32
    return %c0_i32, %c0_i32_0 : i32, i32
  }
  func.func @transform_4(%arg0: i32) -> (i32, i32, i32) {
    %c0_i32 = arith.constant 0 : i32
    %c0_i32_0 = arith.constant 0 : i32
    %c0_i32_1 = arith.constant 0 : i32
    %c0_i32_2 = arith.constant 0 : i32
    return %c0_i32, %c0_i32_0, %c0_i32_1 : i32, i32, i32
  }
  func.func @transform_5(%arg0: i32) -> (i32, i32) {
    %c0_i32 = arith.constant 0 : i32
    %c0_i32_0 = arith.constant 0 : i32
    %c0_i32_1 = arith.constant 0 : i32
    return %c0_i32, %c0_i32_0 : i32, i32
  }
  func.func @transform_6(%arg0: i32) -> (i32, i32) {
    %c0_i32 = arith.constant 0 : i32
    %c0_i32_0 = arith.constant 0 : i32
    %c0_i32_1 = arith.constant 0 : i32
    return %c0_i32, %c0_i32_0 : i32, i32
  }
  func.func @transform_7(%arg0: i32) -> (i32, i32, i32) {
    %c0_i32 = arith.constant 0 : i32
    %c0_i32_0 = arith.constant 0 : i32
    %c0_i32_1 = arith.constant 0 : i32
    %c0_i32_2 = arith.constant 0 : i32
    return %c0_i32, %c0_i32_0, %c0_i32_1 : i32, i32, i32
  }
  func.func @transform_8(%arg0: i32) -> (i32, i32) {
    %c0_i32 = arith.constant 0 : i32
    %c0_i32_0 = arith.constant 0 : i32
    %c0_i32_1 = arith.constant 0 : i32
    return %c0_i32, %c0_i32_0 : i32, i32
  }
  func.func @transform_9(%arg0: i32) -> (i32, i32) {
    %c0_i32 = arith.constant 0 : i32
    %c0_i32_0 = arith.constant 0 : i32
    %c0_i32_1 = arith.constant 0 : i32
    return %c0_i32, %c0_i32_0 : i32, i32
  }
  func.func @transform_10(%arg0: i32) -> (i32, i32) {
    %c0_i32 = arith.constant 0 : i32
    %c0_i32_0 = arith.constant 0 : i32
    %c0_i32_1 = arith.constant 0 : i32
    return %c0_i32, %c0_i32_0 : i32, i32
  }
  func.func @transform_11(%arg0: i32) -> (i32, i32, i32) {
    %c0_i32 = arith.constant 0 : i32
    %c0_i32_0 = arith.constant 0 : i32
    %c0_i32_1 = arith.constant 0 : i32
    return %arg0, %c0_i32, %c0_i32_0 : i32, i32, i32
  }
}

</mosaic_0001>

<bundles_post_ra>
// kernel: encoder_forward.1
= control target key start
LH: loop header
LB: loop body
LE: loop exit
PB: predicated region body
PF: predicated region fallthrough
CT: control target
= control target key end

     0   :  { %s3103_s17 = smov 0   ;;  %s3476_s0 = inlined_call_operand.vmem [shape: f32[2,4,256], index: 0, kind: input, shape index: {}]   ;;  %s3477_s1 = inlined_call_operand.vmem [shape: f32[9,8,4], index: 1, kind: input, shape index: {}]   ;;  %s3478_s2 = inlined_call_operand.vmem [shape: f32[8,1], index: 2, kind: input, shape index: {}]   ;;  %s3479_s3 = inlined_call_operand.vmem [shape: f32[205,49], index: 3, kind: input, shape index: {}]   ;;  %s3480_s4 = inlined_call_operand.vmem [shape: f32[9,16,8], index: 4, kind: input, shape index: {}]   ;;  %s3481_s5 = inlined_call_operand.vmem [shape: f32[16,1], index: 5, kind: input, shape index: {}]   ;;  %s3482_s6 = inlined_call_operand.vmem [shape: f32[25,4], index: 6, kind: input, shape index: {}]   ;;  %s3483_s7 = inlined_call_operand.vmem [shape: f32[4,16,16], index: 7, kind: input, shape index: {}]   ;;  %s3484_s8 = inlined_call_operand.vmem [shape: f32[16,1], index: 8, kind: input, shape index: {}]   ;;  %s3485_s9 = inlined_call_operand.vmem [shape: f32[16,16], index: 9, kind: input, shape index: {}]   ;;  %s3486_s10 = inlined_call_operand.vmem [shape: f32[16,1], index: 10, kind: input, shape index: {}]   ;;  %s3487_s11 = inlined_call_operand.vmem [shape: f32[2,16,1], index: 11, kind: output, shape index: {}]  }
   0x1 LB: > { %s2745_s18 = sadd.s32 4294967295, %s3025_s17   ;;  %p2749_p0 = scmp.ge.s32.totalorder %s3025_s17, 1  ;;  %s3025_s17 = sphi %s3103_s17, %s21_s17  }
   0x2   : > { %p337_p1 = scmp.lt.s32.totalorder %s3025_s17, 3 }
   0x4   : > { %p338_p2 = pnand %p2749_p0, %p337_p1 }
   0x5   : > { %p377_p3 = scmp.lt.s32.totalorder (!%p338_p2), %s2745_s18, 1  ;;  %s3028_s23 = smov (!%p338_p2), 126  }
   0x6   : > { %341 = sbr.rel (%p338_p2) target bundleno = 2097 (0x831), region = 64  ;;  %s3029_s24 = smov (!%p338_p2), 127  }
   0x7   : > { %s3030_s27 = smov (!%p338_p2), 112   ;;  %s3031_s28 = smov (!%p338_p2), 111  }
   0x8   : > { %s3032_s29 = smov (!%p338_p2), 110   ;;  %s3034_s30 = smov (!%p338_p2), 96  }
   0x9   : > { %s3035_s12 = smov (!%p338_p2), 95   ;;  %s3036_s13 = smov (!%p338_p2), 94  }
   0xa   : > { %s3037_s16 = smov (!%p338_p2), 120   ;;  %s3039_s20 = smov (!%p338_p2), 114  }
   0xb   : > { %s3489_s18 = smov (!%p377_p3, %s2745_s18), 1  ;;  %v3027_v0 = vmov 0.0   ;;  %vm403_vm0 = vcmask 1043456   ;;  %v388_v3 = vld [vmem:[%s3477_s1] sm:$0xff]  ;;  %vm399_vm1 = vcmask 31744   ;;  %v3033_v4 = vmov 0  }
   0xc   : > { %550 = vmatprep.mubr.f32.mxu1 %v3027_v0  ;;  %472 = vmatprep.mubr.f32.mxu0 %v3027_v0  ;;  %s2846_s19 = sshll.u32 %s3489_s18, 3  ;;  %v1173_v5 = vld [vmem:[%s3478_s2] sm:$0xff]  ;;  %vm651_vm2 = vcmask 916480   ;;  %vm397_vm3 = vcmask 1039360   ;;  %vm563_vm4 = vcmask 1031168   ;;  %v2754_v12 = vld [vmem:[%s3477_s1 + $0x8] sm:$0xff] }
   0xd   : > { %s381_s22 = scalar_lea.vmem %s3476_s0, %s2846_s19  ;;  %3016 = vset.pattern.permute.xlu0 %v3033_v4  ;;  %3017 = vset.pattern.permute.xlu1 %v3033_v4  ;;  %vm739_vm5 = vcmask 908288   ;;  %v2765_v15 = vld [vmem:[%s3477_s1 + $0x18] sm:$0xff]  ;;  %v2761_v19 = vld [vmem:[%s3477_s1 + $0x10] sm:$0xff]  ;;  %vm827_vm6 = vcmask 900096   ;;  %v2769_v23 = vld [vmem:[%s3477_s1 + $0x20] sm:$0xff]  ;;  %vm915_vm7 = vcmask 785408  }
   0xe   : > { %v387_v1 = vld [vmem:[%s381_s22] sm:$0xff]  ;;  %v2773_v24 = vld [vmem:[%s3477_s1 + $0x28] sm:$0xff]  ;;  %v2777_v28 = vld [vmem:[%s3477_s1 + $0x30] sm:$0xff]  ;;  %vm1003_vm8 = vcmask 777216   ;;  %vm1091_vm9 = vcmask 769024   ;;  %vm1235_vm10 = vcmask 1044480  }
   0xf   : > { %559 = vrot.lane.b32.xlu1 %v387_v1, %s3028_s23  ;;  %393 = vrot.lane.b32.xlu0 %v387_v1, %s3029_s24  ;;  %v392_v2 = vcombine.high %v387_v1, %v387_v1  ;;  %v2781_v32 = vld [vmem:[%s3477_s1 + $0x38] sm:$0xff]  ;;  %v2785_v36 = vld [vmem:[%s3477_s1 + $0x40] sm:$0xff]  ;;  %vm1231_vm11 = vcmask 629760   ;;  %vm1318_vm12 = vcmask 64512   ;;  %s3038_s19 = smov 121   ;;  %s3040_s21 = smov 119  }
  0x10   : > { %s3041_s22 = smov 113   ;;  %vm2151_vm13 = vcmask 1040384   ;;  %vm2144_vm14 = vcmask 203776   ;;  %vm2234_vm15 = vcmask 130048  }
  0x11   : > { %2758 = vmatprep.subr.msk.mxu1 %vm403_vm0, %v392_v2 }
  0x12   : > { %2759 = vmatpush1.msk.msra.mxu1 %vm403_vm0, %v387_v1 }
  0x13   : > { %647 = vrot.lane.b32.xlu0 %v387_v1, %s3030_s27  ;;  %561 = vrot.lane.b32.xlu1 %v392_v2, %s3028_s23 }
  0x14   : > { %2760 = vmatmul.mubr.msk.f32.vlgmr.msra.gmra.mxu1 %vm399_vm1, %v388_v3 }
  0x15   : > { %724 = vmatprep.mubr.f32.mxu1 %v3027_v0 }
  0x17   : > { %649 = vrot.lane.b32.xlu1 %v392_v2, %s3030_s27  ;;  %395 = vrot.lane.b32.xlu0 %v392_v2, %s3029_s24 }
  0x1b   : > { %737 = vrot.lane.b32.xlu1 %v392_v2, %s3031_s28  ;;  %735 = vrot.lane.b32.xlu0 %v387_v1, %s3031_s28 }
  0x1f   : > { %825 = vrot.lane.b32.xlu1 %v392_v2, %s3032_s29  ;;  %823 = vrot.lane.b32.xlu0 %v387_v1, %s3032_s29 }
  0x23   : > { %913 = vrot.lane.b32.xlu1 %v392_v2, %s3034_s30  ;;  %911 = vrot.lane.b32.xlu0 %v387_v1, %s3034_s30 }
  0x27   : > { %1001 = vrot.lane.b32.xlu1 %v392_v2, %s3035_s12  ;;  %999 = vrot.lane.b32.xlu0 %v387_v1, %s3035_s12 }
  0x2b   : > { %1089 = vrot.lane.b32.xlu1 %v392_v2, %s3036_s13  ;;  %1087 = vrot.lane.b32.xlu0 %v387_v1, %s3036_s13 }
  0x2f   : > { %1176 = vperm.xlu0 %3016, %v1173_v5  }
  0x81   : > { %v560_v6 = vpop.permute.xlu1 %559  ;;  %v394_v7 = vpop.permute.xlu0 %393 }
  0x85   : > { %v648_v8 = vpop.permute.xlu0 %647  ;;  %v562_v9 = vpop.permute.xlu1 %561 }
  0x86   : > { %v564_v16 = vsel %vm563_vm4, %v560_v6, %v562_v9 }
  0x89   : > { %v650_v10 = vpop.permute.xlu1 %649  ;;  %v396_v11 = vpop.permute.xlu0 %395 }
  0x8a   : > { %v652_v13 = vsel %vm651_vm2, %v648_v8, %v650_v10  ;;  %2755 = vmatprep.subr.msk.mxu0 %vm403_vm0, %v396_v11  ;;  %2766 = vmatprep.subr.msk.mxu1 %vm403_vm0, %v650_v10  ;;  %v398_v14 = vsel %vm397_vm3, %v394_v7, %v396_v11  ;;  %v1220_v8 = vld [vmem:[%s3479_s3 + $0x78] sm:$0xff] }
  0x8b   : > { %2756 = vmatpush1.msk.msra.mxu0 %vm403_vm0, %v398_v14  ;;  %2767 = vmatpush1.msk.msra.mxu1 %vm403_vm0, %v652_v13  ;;  %v1218_v13 = vld [vmem:[%s3479_s3 + $0x68] sm:$0xff] }
  0x8c   : > { %2757 = vmatmul.mubr.msk.f32.vlgmr.msra.gmra.mxu0 %vm399_vm1, %v2754_v12  ;;  %2762 = vmatprep.subr.msk.mxu0 %vm403_vm0, %v562_v9  ;;  %v1219_v9 = vld [vmem:[%s3479_s3 + $0x70] sm:$0xff] }
  0x8d   : > { %v738_v17 = vpop.permute.xlu1 %737  ;;  %2763 = vmatpush1.msk.msra.mxu0 %vm403_vm0, %v564_v16  ;;  %v736_v18 = vpop.permute.xlu0 %735  ;;  %636 = vmatprep.mubr.f32.mxu0 %v3027_v0  ;;  %v1217_v16 = vld [vmem:[%s3479_s3 + $0x60] sm:$0xff] }
  0x8e   : > { %v740_v20 = vsel %vm739_vm5, %v736_v18, %v738_v17  ;;  %2770 = vmatprep.subr.msk.mxu0 %vm403_vm0, %v738_v17  ;;  %2768 = vmatmul.mubr.msk.f32.vlgmr.msra.gmra.mxu1 %vm399_vm1, %v2765_v15  ;;  %v1216_v17 = vld [vmem:[%s3479_s3 + $0x58] sm:$0xff] }
  0x8f   : > { %900 = vmatprep.mubr.f32.mxu1 %v3027_v0 }
  0x90   : > { %2764 = vmatmul.mubr.msk.f32.vlgmr.msra.gmra.mxu0 %vm399_vm1, %v2761_v19  ;;  %v1215_v19 = vld [vmem:[%s3479_s3 + $0x50] sm:$0xff] }
  0x91   : > { %2771 = vmatpush1.msk.msra.mxu0 %vm403_vm0, %v740_v20  ;;  %v826_v21 = vpop.permute.xlu1 %825  ;;  %v824_v22 = vpop.permute.xlu0 %823  ;;  %812 = vmatprep.mubr.f32.mxu0 %v3027_v0  ;;  %v1214_v20 = vld [vmem:[%s3479_s3 + $0x48] sm:$0xff] }
  0x92   : > { %v828_v25 = vsel %vm827_vm6, %v824_v22, %v826_v21  ;;  %2774 = vmatprep.subr.msk.mxu1 %vm403_vm0, %v826_v21  ;;  %v1213_v21 = vld [vmem:[%s3479_s3 + $0x40] sm:$0xff]  ;;  %v1212_v22 = vld [vmem:[%s3479_s3 + $0x38] sm:$0xff] }
  0x93   : > { %2775 = vmatpush1.msk.msra.mxu1 %vm403_vm0, %v828_v25  ;;  %v1209_v25 = vld [vmem:[%s3479_s3 + $0x20] sm:$0xff] }
  0x94   : > { %2772 = vmatmul.mubr.msk.f32.vlgmr.msra.gmra.mxu0 %vm399_vm1, %v2769_v23  ;;  %2776 = vmatmul.mubr.msk.f32.vlgmr.msra.gmra.mxu1 %vm399_vm1, %v2773_v24  ;;  %v1211_v23 = vld [vmem:[%s3479_s3 + $0x30] sm:$0xff]  ;;  %v1210_v24 = vld [vmem:[%s3479_s3 + $0x28] sm:$0xff] }
  0x95   : > { %v914_v26 = vpop.permute.xlu1 %913  ;;  %v912_v27 = vpop.permute.xlu0 %911  ;;  %988 = vmatprep.mubr.f32.mxu0 %v3027_v0  ;;  %1076 = vmatprep.mubr.f32.mxu1 %v3027_v0 }
  0x96   : > { %v916_v29 = vsel %vm915_vm7, %v912_v27, %v914_v26  ;;  %2778 = vmatprep.subr.msk.mxu0 %vm403_vm0, %v914_v26  ;;  %v1208_v26 = vld [vmem:[%s3479_s3 + $0x18] sm:$0xff]  ;;  %v1207_v27 = vld [vmem:[%s3479_s3 + $0x10] sm:$0xff] }
  0x97   : > { %2779 = vmatpush1.msk.msra.mxu0 %vm403_vm0, %v916_v29  ;;  %v1205_v29 = vld [vmem:[%s3479_s3] sm:$0xff] }
  0x98   : > { %2780 = vmatmul.mubr.msk.f32.vlgmr.msra.gmra.mxu0 %vm399_vm1, %v2777_v28  ;;  %v1206_v28 = vld [vmem:[%s3479_s3 + $0x8] sm:$0xff] }
  0x99   : > { %v1002_v30 = vpop.permute.xlu1 %1001  ;;  %v1000_v31 = vpop.permute.xlu0 %999  ;;  %1164 = vmatprep.mubr.f32.mxu0 %v3027_v0 }
  0x9a   : > { %v1004_v33 = vsel %vm1003_vm8, %v1000_v31, %v1002_v30  ;;  %2782 = vmatprep.subr.msk.mxu1 %vm403_vm0, %v1002_v30  ;;  %v1230_v30 = vld [vmem:[%s3479_s3 + $0xc8] sm:$0x1f]  ;;  %v1229_v31 = vld [vmem:[%s3479_s3 + $0xc0] sm:$0xff] }
  0x9b   : > { %2783 = vmatpush1.msk.msra.mxu1 %vm403_vm0, %v1004_v33  ;;  %v1227_v33 = vld [vmem:[%s3479_s3 + $0xb0] sm:$0xff] }
  0x9c   : > { %2784 = vmatmul.mubr.msk.f32.vlgmr.msra.gmra.mxu1 %vm399_vm1, %v2781_v32  ;;  %1239 = vmatprep.subr.mxu1 %v3027_v0  ;;  %v1228_v32 = vld [vmem:[%s3479_s3 + $0xb8] sm:$0xff] }
  0x9d   : > { %v1090_v34 = vpop.permute.xlu1 %1089  ;;  %v1088_v35 = vpop.permute.xlu0 %1087  ;;  %1240 = vmatpush1.msra.mxu1 %v1220_v8  ;;  %v2813_v8 = vld [vmem:[%s3480_s4 + $0x60] sm:$0xff] }
  0x9e   : > { %v1092_v37 = vsel %vm1091_vm9, %v1088_v35, %v1090_v34  ;;  %2786 = vmatprep.subr.msk.mxu0 %vm403_vm0, %v1090_v34  ;;  %1241 = vmatprep.subr.mxu1 %v3027_v0  ;;  %v1226_v34 = vld [vmem:[%s3479_s3 + $0xa8] sm:$0xff]  ;;  %v1225_v35 = vld [vmem:[%s3479_s3 + $0xa0] sm:$0xff] }
  0x9f   : > { %2787 = vmatpush1.msk.msra.mxu0 %vm403_vm0, %v1092_v37  ;;  %1242 = vmatpush1.msra.mxu1 %v1219_v9  ;;  %v1223_v37 = vld [vmem:[%s3479_s3 + $0x90] sm:$0xff] }
  0xa0   : > { %2788 = vmatmul.mubr.msk.f32.vlgmr.msra.gmra.mxu0 %vm399_vm1, %v2785_v36  ;;  %1243 = vmatprep.subr.mxu1 %v3027_v0  ;;  %v1224_v36 = vld [vmem:[%s3479_s3 + $0x98] sm:$0xff] }
  0xa1   : > { %1244 = vmatpush1.msra.mxu1 %v1218_v13  ;;  %v2818_v13 = vld [vmem:[%s3480_s4 + $0x78] sm:$0xff] }
  0xa2   : > { %1245 = vmatprep.subr.mxu1 %v3027_v0 }
  0xa3   : > { %1246 = vmatpush1.msra.mxu1 %v1217_v16 }
  0xa4   : > { %1247 = vmatprep.subr.mxu1 %v3027_v0 }
  0xa5   : > { %1248 = vmatpush1.msra.mxu1 %v1216_v17 }
  0xa6   : > { %1249 = vmatprep.subr.mxu1 %v3027_v0 }
  0xa7   : > { %1250 = vmatpush1.msra.mxu1 %v1215_v19 }
  0xa8   : > { %1251 = vmatprep.subr.mxu1 %v3027_v0 }
  0xa9   : > { %1252 = vmatpush1.msra.mxu1 %v1214_v20 }
  0xaa   : > { %v1177_v5 = vpop.permute.xlu0 %1176  ;;  %1253 = vmatprep.subr.mxu1 %v3027_v0 }
  0xab   : > { %1254 = vmatpush1.msra.mxu1 %v1213_v21 }
  0xac   : > { %1255 = vmatprep.subr.mxu1 %v3027_v0 }
  0xad   : > { %1256 = vmatpush1.msra.mxu1 %v1212_v22 }
  0xae   : > { %1257 = vmatprep.subr.mxu1 %v3027_v0 }
  0xaf   : > { %1258 = vmatpush1.msra.mxu1 %v1211_v23 }
  0xb0   : > { %1259 = vmatprep.subr.mxu1 %v3027_v0 }
  0xb1   : > { %1260 = vmatpush1.msra.mxu1 %v1210_v24 }
  0xb2   : > { %1261 = vmatprep.subr.mxu1 %v3027_v0 }
  0xb3   : > { %1262 = vmatpush1.msra.mxu1 %v1209_v25 }
  0xb4   : > { %1263 = vmatprep.subr.mxu1 %v3027_v0 }
  0xb5   : > { %1264 = vmatpush1.msra.mxu1 %v1208_v26 }
  0xb6   : > { %1265 = vmatprep.subr.mxu1 %v3027_v0 }
  0xb7   : > { %1266 = vmatpush1.msra.mxu1 %v1207_v27 }
  0xb8   : > { %1267 = vmatprep.subr.mxu1 %v3027_v0 }
  0xb9   : > { %1268 = vmatpush1.msra.mxu1 %v1206_v28 }
  0xba   : > { %1269 = vmatprep.subr.mxu1 %v3027_v0 }
  0xbb   : > { %1270 = vmatpush1.msra.mxu1 %v1205_v29 }
  0xbc   : > { %1283 = vmatprep.subr.mxu1 %v3027_v0 }
  0xbd   : > { %2789 = vmatpush2.msk.msra.mxu1 %vm1235_vm10, %v1230_v30 }
  0xbe   : > { %1285 = vmatprep.subr.mxu1 %v3027_v0 }
  0xbf   : > { %1286 = vmatpush2.msra.mxu1 %v1229_v31 }
  0xc0   : > { %1287 = vmatprep.subr.mxu1 %v3027_v0 }
  0xc1   : > { %1288 = vmatpush2.msra.mxu1 %v1228_v32 }
  0xc2   : > { %1289 = vmatprep.subr.mxu1 %v3027_v0 }
  0xc3   : > { %1290 = vmatpush2.msra.mxu1 %v1227_v33 }
  0xc4   : > { %1291 = vmatprep.subr.mxu1 %v3027_v0 }
  0xc5   : > { %1292 = vmatpush2.msra.mxu1 %v1226_v34 }
  0xc6   : > { %1293 = vmatprep.subr.mxu1 %v3027_v0 }
  0xc7   : > { %1294 = vmatpush2.msra.mxu1 %v1225_v35 }
  0xc8   : > { %1295 = vmatprep.subr.mxu1 %v3027_v0 }
  0xc9   : > { %1296 = vmatpush2.msra.mxu1 %v1224_v36 }
  0xca   : > { %1297 = vmatprep.subr.mxu1 %v3027_v0 }
  0xcb   : > { %1298 = vmatpush2.msra.mxu1 %v1223_v37 }
  0xcc   : > { %1299 = vmatprep.subr.mxu1 %v3027_v0 }
  0xd4   : > { %v552_v38 = vpop.f32.mrf.mxu1 }
  0xd6   : > { %v554_v39 = vpop.f32.mrf.mxu1 }
 0x14c   : > { %v474_v40 = vpop.f32.mrf.mxu0 }
 0x14d   : > { %v553_v41 = vadd.f32 %v552_v38, %v474_v40  ;;  %v1222_v38 = vld [vmem:[%s3479_s3 + $0x88] sm:$0xff] }
 0x14e   : > { %v476_v42 = vpop.f32.mrf.mxu0  ;;  %v726_v43 = vpop.f32.mrf.mxu1  ;;  %1300 = vmatpush2.msra.mxu1 %v1222_v38 }
 0x14f   : > { %v555_v44 = vadd.f32 %v554_v39, %v476_v42  ;;  %v1221_v39 = vld [vmem:[%s3479_s3 + $0x80] sm:$0xff]  ;;  %1301 = vmatprep.subr.mxu1 %v3027_v0 }
 0x150   : > { %v638_v45 = vpop.f32.mrf.mxu0  ;;  %v728_v46 = vpop.f32.mrf.mxu1  ;;  %1302 = vmatpush2.msra.mxu1 %v1221_v39 }
 0x151   : > { %v643_v47 = vadd.f32 %v638_v45, %v553_v41 }
 0x152   : > { %v640_v48 = vpop.f32.mrf.mxu0 }
 0x153   : > { %v644_v49 = vadd.f32 %v640_v48, %v555_v44  ;;  %v731_v50 = vadd.f32 %v726_v43, %v643_v47 }
 0x154   : > { %v814_v51 = vpop.f32.mrf.mxu0  ;;  %v902_v52 = vpop.f32.mrf.mxu1 }
 0x155   : > { %v732_v53 = vadd.f32 %v728_v46, %v644_v49  ;;  %v819_v54 = vadd.f32 %v814_v51, %v731_v50  ;;  %v2791_v49 = vld [vmem:[%s3480_s4 + $0x10] sm:$0xff] }
 0x156   : > { %v816_v55 = vpop.f32.mrf.mxu0  ;;  %v904_v58 = vpop.f32.mrf.mxu1  ;;  %2903 = vmatprep.mubr.msk.f32.mxu0 %vm1318_vm12, %v2791_v49 }
 0x157   : > { %v820_v56 = vadd.f32 %v816_v55, %v732_v53  ;;  %v907_v57 = vadd.f32 %v902_v52, %v819_v54  ;;  %v2104_v52 = vld [vmem:[%s3481_s5] sm:$0xff]  ;;  %v2105_v53 = vld [vmem:[%s3481_s5 + $0x8] sm:$0xff]  ;;  %v2792_v55 = vld [vmem:[%s3480_s4 + $0x18] sm:$0xff] }
 0x158   : > { %v990_v59 = vpop.f32.mrf.mxu0 }
 0x159   : > { %v908_v60 = vadd.f32 %v904_v58, %v820_v56  ;;  %v995_v61 = vadd.f32 %v990_v59, %v907_v57  ;;  %v1309_v56 = vld [vmem:[%s3480_s4] sm:$0xff]  ;;  %v1310_v58 = vld [vmem:[%s3480_s4 + $0x8] sm:$0xff] }
 0x15a   : > { %v992_v62 = vpop.f32.mrf.mxu0  ;;  %v2797_v59 = vld [vmem:[%s3480_s4 + $0x20] sm:$0xff] }
 0x15b   : > { %v996_v2 = vadd.f32 %v992_v62, %v908_v60  ;;  %v2801_v62 = vld [vmem:[%s3480_s4 + $0x30] sm:$0xff] }
 0x15c   : > { %v1078_v63 = vpop.f32.mrf.mxu1 }
 0x15d   : > { %v1083_v3 = vadd.f32 %v1078_v63, %v995_v61  ;;  %v2798_v61 = vld [vmem:[%s3480_s4 + $0x28] sm:$0xff] }
 0x15e   : > { %v1080_v1 = vpop.f32.mrf.mxu1 }
 0x15f   : > { %v1084_v6 = vadd.f32 %v1080_v1, %v996_v2  ;;  %v2802_v1 = vld [vmem:[%s3480_s4 + $0x38] sm:$0xff]  ;;  %v2805_v2 = vld [vmem:[%s3480_s4 + $0x40] sm:$0xff] }
 0x160   : > { %v1166_v4 = vpop.f32.mrf.mxu0 }
 0x161   : > { %v1171_v7 = vadd.f32 %v1166_v4, %v1083_v3  ;;  %v2806_v4 = vld [vmem:[%s3480_s4 + $0x48] sm:$0xff] }
 0x162   : > { %v1168_v10 = vpop.f32.mrf.mxu0 }
 0x163   : > { %v1172_v11 = vadd.f32 %v1168_v10, %v1084_v6  ;;  %v3198_v12 = vadd.f32 %v1177_v5, %v1171_v7  ;;  %v2810_v7 = vld [vmem:[%s3480_s4 + $0x58] sm:$0xff]  ;;  %v2814_v10 = vld [vmem:[%s3480_s4 + $0x68] sm:$0xff] }
 0x165   : > { %v3204_v14 = vadd.f32 %v1177_v5, %v1172_v11  ;;  %v1181_v15 = vmax.f32 %v3198_v12, 0.0  ;;  %v2809_v5 = vld [vmem:[%s3480_s4 + $0x50] sm:$0xff] }
 0x166   : > { %v2817_v11 = vld [vmem:[%s3480_s4 + $0x70] sm:$0xff] }
 0x167   : > { %1185 = vrot.lane.b32.xlu1 %v1181_v15, %s3029_s24  ;;  %v1182_v18 = vmax.f32 %v3204_v14, 0.0  ;;  %v2821_v14 = vld [vmem:[%s3480_s4 + $0x80] sm:$0xff] }
 0x16b   : > { %1187 = vrot.lane.b32.xlu1 %v1182_v18, %s3029_s24 }
 0x1d9   : > { %v1186_v40 = vpop.permute.xlu1 %1185 }
 0x1dd   : > { %v1188_v41 = vpop.permute.xlu1 %1187 }
 0x1de   : > { %v1189_v42 = vsel %vm397_vm3, %v1186_v40, %v1188_v41  ;;  %v1193_v43 = vmax.f32 %v1182_v18, %v1188_v41 }
 0x1df   : > { %v1192_v44 = vmax.f32 %v1181_v15, %v1189_v42  ;;  %v2822_v15 = vld [vmem:[%s3480_s4 + $0x88] sm:$0xff] }
 0x1e0   : > { %1198 = vrot.lane.b32.xlu1 %v1193_v43, %s3030_s27 }
 0x1e1   : > { %1196 = vrot.lane.b32.xlu0 %v1192_v44, %s3030_s27 }
 0x252   : > { %v1199_v45 = vpop.permute.xlu1 %1198 }
 0x253   : > { %v1204_v46 = vmax.f32 %v1193_v43, %v1199_v45  ;;  %v1197_v47 = vpop.permute.xlu0 %1196  ;;  %v2143_v43 = vld [vmem:[%s3482_s6 + $0x18] sm:$0x1] }
 0x254   : > { %v1200_v0 = vsel %vm651_vm2, %v1197_v47, %v1199_v45  ;;  %vm2687_vm2 = vcmask 7168  }
 0x255   : > { %v1203_v48 = vmax.f32 %v1192_v44, %v1200_v0  ;;  %2790 = vmatprep.mubr.msk.f32.mxu1 %vm1231_vm11, %v1204_v46  ;;  %v2142_v44 = vld [vmem:[%s3482_s6 + $0x10] sm:$0xff] }
 0x257   : > { %1304 = vmatmul.mubr.f32.vlgmr.msra.gmra.mxu1 %v1203_v48 }
 0x317   : > { %v1305_v50 = vpop.f32.mrf.mxu1 }
 0x318   : > { %1484 = vrot.lane.b32.xlu1 %v1305_v50, %s3028_s23  ;;  %1315 = vrot.lane.b32.xlu0 %v1305_v50, %s3029_s24 }
 0x319   : > { %v1307_v51 = vpop.f32.mrf.mxu1 }
 0x31c   : > { %1662 = vrot.lane.b32.xlu1 %v1305_v50, %s3037_s16  ;;  %1573 = vrot.lane.b32.xlu0 %v1305_v50, %s3038_s19 }
 0x320   : > { %1840 = vrot.lane.b32.xlu1 %v1305_v50, %s3039_s20  ;;  %1751 = vrot.lane.b32.xlu0 %v1305_v50, %s3040_s21  ;;  %s3042_s20 = smov 125  }
 0x324   : > { %2018 = vrot.lane.b32.xlu1 %v1305_v50, %s3030_s27  ;;  %1929 = vrot.lane.b32.xlu0 %v1305_v50, %s3041_s22 }
 0x328   : > { %2108 = vperm.xlu0 %3016, %v2104_v52   ;;  %2113 = vperm.xlu1 %3017, %v2105_v53  }
 0x38a   : > { %v1316_v54 = vpop.permute.xlu0 %1315  ;;  %v1485_v57 = vpop.permute.xlu1 %1484 }
 0x38b   : > { %2901 = vmatprep.subr.mxu0 %v1316_v54 }
 0x38c   : > { %2902 = vmatpush3.msra.mxu0 %v1316_v54 }
 0x38d   : > { %2904 = vmatmul.mubr.msk.f32.vlgmr.msra.gmra.mxu0 %vm1318_vm12, %v2792_v55  ;;  %2906 = vmatprep.subr.mxu0 %v1305_v50 }
 0x38e   : > { %2907 = vmatpush3.msra.mxu0 %v1305_v50  ;;  %2908 = vmatprep.mubr.msk.f32.mxu0 %vm1318_vm12, %v1309_v56  ;;  %v1574_v60 = vpop.permute.xlu0 %1573  ;;  %v1663_v63 = vpop.permute.xlu1 %1662 }
 0x38f   : > { %2911 = vmatprep.subr.mxu0 %v1485_v57 }
 0x391   : > { %2909 = vmatmul.mubr.msk.f32.vlgmr.msra.gmra.mxu0 %vm1318_vm12, %v1310_v58  ;;  %v2140_v58 = vld [vmem:[%s3482_s6] sm:$0xff] }
 0x392   : > { %2912 = vmatpush3.msra.mxu0 %v1485_v57  ;;  %2913 = vmatprep.mubr.msk.f32.mxu0 %vm1318_vm12, %v2797_v59  ;;  %v1752_v3 = vpop.permute.xlu0 %1751  ;;  %v1841_v6 = vpop.permute.xlu1 %1840  ;;  %v2141_v57 = vld [vmem:[%s3482_s6 + $0x8] sm:$0xff] }
 0x393   : > { %2916 = vmatprep.subr.mxu0 %v1574_v60 }
 0x395   : > { %2914 = vmatmul.mubr.msk.f32.vlgmr.msra.gmra.mxu0 %vm1318_vm12, %v2798_v61 }
 0x396   : > { %2917 = vmatpush3.msra.mxu0 %v1574_v60  ;;  %2918 = vmatprep.mubr.msk.f32.mxu0 %vm1318_vm12, %v2801_v62  ;;  %v1930_v9 = vpop.permute.xlu0 %1929  ;;  %v2019_v12 = vpop.permute.xlu1 %2018 }
 0x397   : > { %2921 = vmatprep.subr.mxu0 %v1663_v63 }
 0x399   : > { %2919 = vmatmul.mubr.msk.f32.vlgmr.msra.gmra.mxu0 %vm1318_vm12, %v2802_v1 }
 0x39a   : > { %2922 = vmatpush3.msra.mxu0 %v1663_v63  ;;  %2923 = vmatprep.mubr.msk.f32.mxu0 %vm1318_vm12, %v2805_v2 }
 0x39b   : > { %2926 = vmatprep.subr.mxu0 %v1752_v3 }
 0x39d   : > { %2924 = vmatmul.mubr.msk.f32.vlgmr.msra.gmra.mxu0 %vm1318_vm12, %v2806_v4  ;;  %v2232_v4 = vld [vmem:[%s3483_s7] sm:$0xff] }
 0x39e   : > { %2927 = vmatpush3.msra.mxu0 %v1752_v3  ;;  %2928 = vmatprep.mubr.msk.f32.mxu0 %vm1318_vm12, %v2809_v5  ;;  %v2834_v5 = vld [vmem:[%s3483_s7 + $0x20] sm:$0xff] }
 0x39f   : > { %2931 = vmatprep.subr.mxu0 %v1841_v6  ;;  %2975 = vmatprep.mubr.msk.f32.mxu1 %vm2234_vm15, %v2834_v5 }
 0x3a1   : > { %2929 = vmatmul.mubr.msk.f32.vlgmr.msra.gmra.mxu0 %vm1318_vm12, %v2810_v7 }
 0x3a2   : > { %2932 = vmatpush3.msra.mxu0 %v1841_v6  ;;  %2933 = vmatprep.mubr.msk.f32.mxu0 %vm1318_vm12, %v2813_v8  ;;  %v2233_v8 = vld [vmem:[%s3483_s7 + $0x8] sm:$0xff] }
 0x3a3   : > { %2936 = vmatprep.subr.mxu0 %v1930_v9  ;;  %v2114_v0 = vpop.permute.xlu1 %2113  ;;  %v2109_v53 = vpop.permute.xlu0 %2108 }
 0x3a5   : > { %2934 = vmatmul.mubr.msk.f32.vlgmr.msra.gmra.mxu0 %vm1318_vm12, %v2814_v10 }
 0x3a6   : > { %2937 = vmatpush3.msra.mxu0 %v1930_v9  ;;  %2938 = vmatprep.mubr.msk.f32.mxu0 %vm1318_vm12, %v2817_v11  ;;  %v2830_v9 = vld [vmem:[%s3483_s7 + $0x10] sm:$0xff] }
 0x3a7   : > { %2941 = vmatprep.subr.mxu0 %v2019_v12 }
 0x3a9   : > { %2939 = vmatmul.mubr.msk.f32.vlgmr.msra.gmra.mxu0 %vm1318_vm12, %v2818_v13  ;;  %v2838_v13 = vld [vmem:[%s3483_s7 + $0x30] sm:$0xff] }
 0x3aa   : > { %2942 = vmatpush3.msra.mxu0 %v2019_v12  ;;  %2943 = vmatprep.mubr.msk.f32.mxu0 %vm1318_vm12, %v2821_v14  ;;  %v2831_v12 = vld [vmem:[%s3483_s7 + $0x18] sm:$0xff] }
 0x3ab   : > { %2946 = vmatprep.subr.msk.mxu0 %vm2151_vm13, %v2143_v43 }
 0x3ad   : > { %2944 = vmatmul.mubr.msk.f32.vlgmr.msra.gmra.mxu0 %vm1318_vm12, %v2822_v15 }
 0x3ae   : > { %2947 = vmatpush3.msk.msra.mxu0 %vm2151_vm13, %v2143_v43  ;;  %v2603_v43 = vld [vmem:[%s3485_s9 + $0x8] sm:$0xff] }
 0x3af   : > { %2948 = vmatprep.subr.mxu0 %v2142_v44 }
 0x3b0   : > { %2949 = vmatpush3.msra.mxu0 %v2142_v44  ;;  %v2605_v44 = vld [vmem:[%s3486_s10 + $0x8] sm:$0xff] }
 0x3b1   : > { %2950 = vmatprep.subr.mxu0 %v2141_v57 }
 0x3b2   : > { %2951 = vmatpush3.msra.mxu0 %v2141_v57 }
 0x3b3   : > { %2952 = vmatprep.subr.mxu0 %v2140_v58 }
 0x3b4   : > { %2953 = vmatpush3.msra.mxu0 %v2140_v58 }
 0x44d   : > { %v2905_v16 = vpop.f32.mrf.mxu0 }
 0x44f   : > { %v1391_v17 = vpop.f32.mrf.mxu0 }
 0x451   : > { %v2910_v18 = vpop.f32.mrf.mxu0 }
 0x452   : > { %v1478_v26 = vadd.f32 %v2910_v18, %v2905_v16  ;;  %v2835_v16 = vld [vmem:[%s3483_s7 + $0x28] sm:$0xff] }
 0x453   : > { %v1472_v19 = vpop.f32.mrf.mxu0 }
 0x454   : > { %v1473_v28 = vadd.f32 %v1472_v19, %v1391_v17  ;;  %v2839_v19 = vld [vmem:[%s3483_s7 + $0x38] sm:$0xff] }
 0x455   : > { %v2915_v20 = vpop.f32.mrf.mxu0 }
 0x456   : > { %v1569_v29 = vadd.f32 %v2915_v20, %v1478_v26  ;;  %v2602_v20 = vld [vmem:[%s3485_s9] sm:$0xff] }
 0x457   : > { %v1559_v21 = vpop.f32.mrf.mxu0 }
 0x458   : > { %v1568_v31 = vadd.f32 %v1559_v21, %v1473_v28 }
 0x459   : > { %v2920_v22 = vpop.f32.mrf.mxu0 }
 0x45a   : > { %v1658_v32 = vadd.f32 %v2920_v22, %v1569_v29  ;;  %v2231_v22 = vld [vmem:[%s3484_s8 + $0x8] sm:$0xff] }
 0x45b   : > { %v1648_v23 = vpop.f32.mrf.mxu0 }
 0x45c   : > { %v1657_v34 = vadd.f32 %v1648_v23, %v1568_v31 }
 0x45d   : > { %v2925_v24 = vpop.f32.mrf.mxu0 }
 0x45e   : > { %v1747_v35 = vadd.f32 %v2925_v24, %v1658_v32 }
 0x45f   : > { %v1737_v25 = vpop.f32.mrf.mxu0 }
 0x460   : > { %v1746_v37 = vadd.f32 %v1737_v25, %v1657_v34  ;;  %v2230_v25 = vld [vmem:[%s3484_s8] sm:$0xff] }
 0x461   : > { %v2930_v27 = vpop.f32.mrf.mxu0 }
 0x462   : > { %v1836_v38 = vadd.f32 %v2930_v27, %v1747_v35 }
 0x463   : > { %v1826_v30 = vpop.f32.mrf.mxu0 }
 0x464   : > { %v1835_v40 = vadd.f32 %v1826_v30, %v1746_v37 }
 0x465   : > { %v2935_v33 = vpop.f32.mrf.mxu0 }
 0x466   : > { %v1925_v41 = vadd.f32 %v2935_v33, %v1836_v38 }
 0x467   : > { %v1915_v36 = vpop.f32.mrf.mxu0 }
 0x468   : > { %v1924_v45 = vadd.f32 %v1915_v36, %v1835_v40 }
 0x469   : > { %v2940_v39 = vpop.f32.mrf.mxu0 }
 0x46a   : > { %v2014_v46 = vadd.f32 %v2940_v39, %v1925_v41 }
 0x46b   : > { %v2004_v42 = vpop.f32.mrf.mxu0 }
 0x46c   : > { %v2013_v48 = vadd.f32 %v2004_v42, %v1924_v45 }
 0x46d   : > { %v2945_v47 = vpop.f32.mrf.mxu0 }
 0x46e   : > { %v2103_v49 = vadd.f32 %v2945_v47, %v2014_v46  ;;  %v2604_v46 = vld [vmem:[%s3486_s10] sm:$0xff] }
 0x46f   : > { %v2093_v50 = vpop.f32.mrf.mxu0 }
 0x470   : > { %v2117_v51 = vadd.f32 %v2114_v0, %v2103_v49  ;;  %v2102_v52 = vadd.f32 %v2093_v50, %v2013_v48 }
 0x472   : > { %v2119_v54 = vmax.f32 %v2117_v51, 0.0  ;;  %v2116_v55 = vadd.f32 %v2109_v53, %v2102_v52 }
 0x474   : > { %v2118_v56 = vmax.f32 %v2116_v55, 0.0  ;;  %2124 = vrot.lane.b32.xlu1 %v2119_v54, %s3029_s24 }
 0x476   : > { %2122 = vrot.lane.b32.xlu0 %v2118_v56, %s3029_s24 }
 0x4e6   : > { %v2125_v59 = vpop.permute.xlu1 %2124 }
 0x4e7   : > { %v2129_v60 = vmax.f32 %v2119_v54, %v2125_v59 }
 0x4e8   : > { %v2123_v61 = vpop.permute.xlu0 %2122 }
 0x4e9   : > { %v2128_v62 = vmax.f32 %v2118_v56, %v2123_v61  ;;  %2134 = vrot.lane.b32.xlu1 %v2129_v60, %s3038_s19 }
 0x4eb   : > { %2132 = vrot.lane.b32.xlu0 %v2128_v62, %s3038_s19 }
 0x55b   : > { %v2135_v63 = vpop.permute.xlu1 %2134 }
 0x55c   : > { %v2139_v3 = vmax.f32 %v2129_v60, %v2135_v63 }
 0x55d   : > { %v2133_v1 = vpop.permute.xlu0 %2132 }
 0x55e   : > { %v2138_v2 = vmax.f32 %v2128_v62, %v2133_v1 }
 0x560   : > { %2954 = vmatprep.mubr.msk.f32.mxu0 %vm2144_vm14, %v2138_v2 }
 0x561   : > { %2955 = vmatmul.mubr.msk.f32.vlgmr.msra.gmra.mxu0 %vm2144_vm14, %v2139_v3 }
 0x562   : > { %2961 = vmatprep.mubr.msk.f32.mxu0 %vm2234_vm15, %v2232_v4 }
 0x621   : > { %v2956_v6 = vpop.f32.mrf.mxu0 }
 0x622   : > { %2325 = vrot.lane.b32.xlu0 %v2956_v6, %s3029_s24  ;;  %2957 = vmatprep.subr.mxu0 %v2956_v6 }
 0x623   : > { %v2221_v7 = vpop.f32.mrf.mxu0  ;;  %2958 = vmatpush3.msra.mxu0 %v2956_v6 }
 0x624   : > { %2323 = vrot.lane.b32.xlu1 %v2221_v7, %s3029_s24  ;;  %2959 = vmatprep.subr.mxu0 %v2221_v7 }
 0x625   : > { %2960 = vmatpush3.msra.mxu0 %v2221_v7 }
 0x626   : > { %2417 = vrot.lane.b32.xlu0 %v2956_v6, %s3028_s23  ;;  %2962 = vmatmul.mubr.msk.f32.vlgmr.msra.gmra.mxu0 %vm2234_vm15, %v2233_v8 }
 0x627   : > { %2968 = vmatprep.mubr.msk.f32.mxu0 %vm2234_vm15, %v2830_v9 }
 0x628   : > { %2415 = vrot.lane.b32.xlu1 %v2221_v7, %s3028_s23 }
 0x62a   : > { %2509 = vrot.lane.b32.xlu0 %v2956_v6, %s3042_s20 }
 0x62c   : > { %2507 = vrot.lane.b32.xlu1 %v2221_v7, %s3042_s20  ;;  %s2847_s20 = sshll.u32 %s3489_s18, 4 }
 0x62d   : > { %s386_s23 = scalar_lea.vmem %s3487_s11, %s2847_s20 }
 0x694   : > { %v2326_v10 = vpop.permute.xlu0 %2325 }
 0x695   : > { %2964 = vmatprep.subr.mxu0 %v2326_v10 }
 0x696   : > { %v2324_v11 = vpop.permute.xlu1 %2323  ;;  %2965 = vmatpush3.msra.mxu0 %v2326_v10 }
 0x697   : > { %2966 = vmatprep.subr.mxu0 %v2324_v11 }
 0x698   : > { %v2418_v14 = vpop.permute.xlu0 %2417  ;;  %2967 = vmatpush3.msra.mxu0 %v2324_v11 }
 0x699   : > { %2971 = vmatprep.subr.mxu1 %v2418_v14  ;;  %2969 = vmatmul.mubr.msk.f32.vlgmr.msra.gmra.mxu0 %vm2234_vm15, %v2831_v12 }
 0x69a   : > { %2972 = vmatpush3.msra.mxu1 %v2418_v14  ;;  %v2416_v15 = vpop.permute.xlu1 %2415  ;;  %2982 = vmatprep.mubr.msk.f32.mxu0 %vm2234_vm15, %v2838_v13 }
 0x69b   : > { %2973 = vmatprep.subr.mxu1 %v2416_v15 }
 0x69c   : > { %v2510_v17 = vpop.permute.xlu0 %2509  ;;  %2974 = vmatpush3.msra.mxu1 %v2416_v15 }
 0x69d   : > { %2976 = vmatmul.mubr.msk.f32.vlgmr.msra.gmra.mxu1 %vm2234_vm15, %v2835_v16  ;;  %2978 = vmatprep.subr.mxu0 %v2510_v17 }
 0x69e   : > { %v2508_v18 = vpop.permute.xlu1 %2507  ;;  %2979 = vmatpush3.msra.mxu0 %v2510_v17  ;;  %2989 = vmatprep.mubr.msk.f32.mxu1 %vm2234_vm15, %v2602_v20 }
 0x69f   : > { %2980 = vmatprep.subr.mxu0 %v2508_v18 }
 0x6a0   : > { %2981 = vmatpush3.msra.mxu0 %v2508_v18 }
 0x6a1   : > { %2983 = vmatmul.mubr.msk.f32.vlgmr.msra.gmra.mxu0 %vm2234_vm15, %v2839_v19 }
 0x6e6   : > { %v2963_v21 = vpop.f32.mrf.mxu0 }
 0x6e7   : > { %v2317_v24 = vadd.f32 %v2963_v21, %v2231_v22 }
 0x6e8   : > { %v2307_v23 = vpop.f32.mrf.mxu0 }
 0x6e9   : > { %v2316_v27 = vadd.f32 %v2307_v23, %v2230_v25 }
 0x759   : > { %v2970_v26 = vpop.f32.mrf.mxu0 }
 0x75a   : > { %v2411_v28 = vadd.f32 %v2970_v26, %v2317_v24 }
 0x75b   : > { %v2401_v29 = vpop.f32.mrf.mxu0 }
 0x75c   : > { %v2410_v32 = vadd.f32 %v2401_v29, %v2316_v27 }
 0x75d   : > { %v2977_v30 = vpop.f32.mrf.mxu1 }
 0x75e   : > { %v2503_v33 = vadd.f32 %v2977_v30, %v2411_v28 }
 0x75f   : > { %v2493_v31 = vpop.f32.mrf.mxu1 }
 0x760   : > { %v2502_v35 = vadd.f32 %v2493_v31, %v2410_v32 }
 0x761   : > { %v2984_v34 = vpop.f32.mrf.mxu0 }
 0x762   : > { %v2595_v36 = vadd.f32 %v2984_v34, %v2503_v33 }
 0x763   : > { %v2585_v37 = vpop.f32.mrf.mxu0 }
 0x764   : > { %v2599_v38 = vmul.f32 0.01, %v2595_v36  ;;  %v2594_v39 = vadd.f32 %v2585_v37, %v2502_v35  ;;  %vm2597_vm0 = vcmp.ge.f32.partialorder %v2595_v36, 0.0 }
 0x766   : > { %v2598_v40 = vmul.f32 0.01, %v2594_v39  ;;  %v2601_v41 = vsel %vm2597_vm0, %v2595_v36, %v2599_v38  ;;  %vm2596_vm1 = vcmp.ge.f32.partialorder %v2594_v39, 0.0 }
 0x767   : > { %2985 = vmatprep.subr.mxu1 %v2601_v41 }
 0x768   : > { %2986 = vmatpush3.msra.mxu1 %v2601_v41  ;;  %v2600_v42 = vsel %vm2596_vm1, %v2594_v39, %v2598_v40 }
 0x769   : > { %2987 = vmatprep.subr.mxu1 %v2600_v42 }
 0x76a   : > { %2988 = vmatpush3.msra.mxu1 %v2600_v42 }
 0x76b   : > { %2990 = vmatmul.mubr.msk.f32.vlgmr.msra.gmra.mxu1 %vm2234_vm15, %v2603_v43 }
 0x82b   : > { %v2991_v45 = vpop.f32.mrf.mxu1 }
 0x82c   : > { %v2684_v47 = vadd.f32 %v2991_v45, %v2605_v44 }
 0x82d   : > { %v2678_v0 = vpop.f32.mrf.mxu1 }
 0x82e   : > { %2689 = vst.msk [vmem:[%s386_s23 + $0x8] sm:$0xff] %vm2687_vm2, %v2684_v47  ;;  %v2679_v48 = vadd.f32 %v2678_v0, %v2604_v46 }
 0x830   : > { %2688 = vst.msk [vmem:[%s386_s23] sm:$0xff] %vm2687_vm2, %v2679_v48 }
 0x831 PF: > { %s21_s17 = sadd.s32 1, %s3025_s17  }
 0x832   : > { %p18_p4 = scmp.ge.s32.totalorder %s21_s17, 4  }
 0x834   :  { %20 = sbr.rel (!%p18_p4) target bundleno = 1 (0x1), region = 113 }

</bundles_post_ra>
